<compile_context>
chip_gen: v7x
topology: tpu7x:2x2x1
jax: 0.10.0
libtpu: 0.0.40
codegen_flags: <defaults>
</compile_context>

<pallas_src>
import functools

import jax
import jax.numpy as jnp
from jax import lax
from jax.experimental import pallas as pl
from jax.experimental.pallas import tpu as pltpu


def _conv3x3(x, w_ref, mask_ref, *, W):
    """3x3 'SAME' convolution of a channel-major slab.

    x        : (C, H*W) f32 value already in registers.
    w_ref    : (C, 9*C) ref packed as [co, k*C + ci], tap index k = ky*3 + kx.
    mask_ref : (9, H*W) f32 ref; 1.0 where tap k samples inside the image.
    """
    C, HW = x.shape
    acc = jnp.zeros((C, HW), jnp.float32)
    for k in range(9):
        dy, dx = k // 3 - 1, k % 3 - 1
        shift = dy * W + dx                      # flattened sample offset
        if shift == 0:                           # center tap: no roll, no mask
            tap = x
        else:
            tap = pltpu.roll(x, (-shift) % HW, axis=1)   # tap[p] = x[p + shift]
            tap = tap * mask_ref[k:k + 1, :]             # zero out-of-image taps
        w_k = w_ref[:, k * C:(k + 1) * C]                # (C, C) weights of tap k
        acc = acc + jnp.dot(w_k, tap, preferred_element_type=jnp.float32)
    return acc


def br_kernel(x_ref, w1_ref, w2_ref, mask_ref, o_ref, *, W):
    x = x_ref[0]                                              # (C, H*W)
    h = jnp.maximum(_conv3x3(x, w1_ref, mask_ref, W=W), 0.0)  # relu(conv1(x))
    y = _conv3x3(h, w2_ref, mask_ref, W=W)                    # conv2(...)
    o_ref[0] = x + y                                          # residual add


def _pack_weights(w_oihw):
    """(C_out, C_in, 3, 3) OIHW -> (C_out, 9*C_in), tap index k = ky*3 + kx."""
    c_out, c_in = w_oihw.shape[0], w_oihw.shape[1]
    return jnp.transpose(w_oihw, (0, 2, 3, 1)).reshape(c_out, 9 * c_in)


def _border_masks(H, W):
    """(9, H*W) f32; mask[k, y*W+x] = 1 iff (y+dy, x+dx) lies inside the image."""
    ys, xs = jnp.meshgrid(jnp.arange(H), jnp.arange(W), indexing="ij")
    rows = []
    for k in range(9):
        dy, dx = k // 3 - 1, k % 3 - 1
        valid = (ys + dy >= 0) & (ys + dy < H) & (xs + dx >= 0) & (xs + dx < W)
        rows.append(valid.reshape(-1))
    return jnp.stack(rows).astype(jnp.float32)


@jax.jit
def br_forward(x_nchw, w1_oihw, w2_oihw):
    """BR forward: x + conv2(relu(conv1(x))); x is (N,C,H,W) f32, weights OIHW."""
    N, C, H, W = x_nchw.shape
    HW = H * W                        # lane dim (256 here, multiple of 128)
    x2d = x_nchw.reshape(N, C, HW)    # pure reshape: no transpose, no jnp.pad;
                                      # the single input stream feeds both the
                                      # convs and the residual add.
    w1p = _pack_weights(w1_oihw)      # (C, 9C): one lane-dense VMEM tile each
    w2p = _pack_weights(w2_oihw)
    mask = _border_masks(H, W)        # (9, HW) border masks (replace padding)

    # NOTE: at large H*W / C, add an H-tile grid axis (halo'd index_map) so
    # blocks fit v7x's 64 MiB VMEM and its second TensorCore also gets work;
    # unnecessary at these sizes.
    out = pl.pallas_call(
        functools.partial(br_kernel, W=W),
        out_shape=jax.ShapeDtypeStruct((N, C, HW), jnp.float32),
        grid=(N,),
        in_specs=[
            pl.BlockSpec((1, C, HW), lambda n: (n, 0, 0)),
            pl.BlockSpec((C, 9 * C), lambda n: (0, 0)),   # same block each step
            pl.BlockSpec((C, 9 * C), lambda n: (0, 0)),   #   -> fetched once
            pl.BlockSpec((9, HW), lambda n: (0, 0)),
        ],
        out_specs=pl.BlockSpec((1, C, HW), lambda n: (n, 0, 0)),
        compiler_params=pltpu.CompilerParams(dimension_semantics=("parallel",)),
    )(x2d, w1p, w2p, mask)

    return out.reshape(N, C, H, W)


def br_reference(x_nchw, w1_oihw, w2_oihw):
    """Pure-JAX reference (lax.conv) matching the PyTorch forward."""
    dn = ("NCHW", "OIHW", "NCHW")
    y = lax.conv_general_dilated(x_nchw, w1_oihw, (1, 1), "SAME",
                                 dimension_numbers=dn)
    y = jnp.maximum(y, 0.0)
    y = lax.conv_general_dilated(y, w2_oihw, (1, 1), "SAME",
                                 dimension_numbers=dn)
    return x_nchw + y


if __name__ == "__main__":
    key = jax.random.PRNGKey(0)
    kx, kw1, kw2 = jax.random.split(key, 3)

    N, C, H, W = 2, 4, 16, 16          # num_class = 4
    x = jax.random.normal(kx, (N, C, H, W), jnp.float32)
    # deterministic synthetic conv weights (OIHW, matching nn.Conv2d), no bias
    w1 = jax.random.normal(kw1, (C, C, 3, 3), jnp.float32) * 0.1
    w2 = jax.random.normal(kw2, (C, C, 3, 3), jnp.float32) * 0.1

    out = br_forward(x, w1, w2)
    jax.block_until_ready(out)

    ref = br_reference(x, w1, w2)
    assert out.shape == (N, C, H, W)
    assert jnp.allclose(out, ref, atol=2e-4, rtol=2e-4), "mismatch vs reference"

    print("KERNEL_OK")
</pallas_src>

<mosaic_0001>
module attributes {stable_mosaic.version = 11 : i64} {
  func.func @br_kernel(%arg0: i32, %arg1: memref<1x4x256xf32, #tpu.memory_space<vmem>>, %arg2: memref<4x36xf32, #tpu.memory_space<vmem>>, %arg3: memref<4x36xf32, #tpu.memory_space<vmem>>, %arg4: memref<9x256xf32, #tpu.memory_space<vmem>>, %arg5: memref<1x4x256xf32, #tpu.memory_space<vmem>>) attributes {dimension_semantics = [#tpu.dimension_semantics<parallel>], iteration_bounds = array<i64: 2>, scalar_prefetch = 0 : i64, scratch_operands = 0 : i64, tpu.core_type = #tpu.core_type<tc>, window_params = [{transform_indices = @transform_0, window_bounds = array<i64: 1, 4, 256>}, {pipeline_mode = #tpu.pipeline_mode<synchronous>, transform_indices = @transform_1, window_bounds = array<i64: 4, 36>}, {pipeline_mode = #tpu.pipeline_mode<synchronous>, transform_indices = @transform_2, window_bounds = array<i64: 4, 36>}, {pipeline_mode = #tpu.pipeline_mode<synchronous>, transform_indices = @transform_3, window_bounds = array<i64: 9, 256>}, {transform_indices = @transform_4, window_bounds = array<i64: 1, 4, 256>}]} {
    %c0 = arith.constant 0 : index
    %c0_0 = arith.constant 0 : index
    %c0_1 = arith.constant 0 : index
    %0 = vector.load %arg1[%c0, %c0_0, %c0_1] : memref<1x4x256xf32, #tpu.memory_space<vmem>>, vector<1x4x256xf32>
    %1 = vector.shape_cast %0 : vector<1x4x256xf32> to vector<4x256xf32>
    %cst = arith.constant 0.000000e+00 : f32
    %2 = vector.broadcast %cst : f32 to vector<4x256xf32>
    %c17_i32 = arith.constant 17 : i32
    %3 = tpu.dynamic_rotate %1 by %c17_i32 dim 1 : vector<4x256xf32>, i32 -> vector<4x256xf32>
    %c0_2 = arith.constant 0 : index
    %c0_3 = arith.constant 0 : index
    %4 = vector.load %arg4[%c0_2, %c0_3] : memref<9x256xf32, #tpu.memory_space<vmem>>, vector<1x256xf32>
    %5 = vector.broadcast %4 : vector<1x256xf32> to vector<4x256xf32>
    %6 = arith.mulf %3, %5 : vector<4x256xf32>
    %c0_4 = arith.constant 0 : index
    %c0_5 = arith.constant 0 : index
    %7 = vector.load %arg2[%c0_4, %c0_5] : memref<4x36xf32, #tpu.memory_space<vmem>>, vector<4x4xf32>
    %cst_6 = arith.constant dense<0.000000e+00> : vector<4x256xf32>
    %8 = tpu.matmul %7, %6, %cst_6 {dimension_numbers = #tpu.dot_dimension_numbers<[1], [0], [0], [1], [0, 0, 1, 1], [], []>} : vector<4x4xf32>, vector<4x256xf32>, vector<4x256xf32> -> vector<4x256xf32>
    %9 = arith.addf %2, %8 : vector<4x256xf32>
    %c16_i32 = arith.constant 16 : i32
    %10 = tpu.dynamic_rotate %1 by %c16_i32 dim 1 : vector<4x256xf32>, i32 -> vector<4x256xf32>
    %c1 = arith.constant 1 : index
    %c0_7 = arith.constant 0 : index
    %11 = vector.load %arg4[%c1, %c0_7] : memref<9x256xf32, #tpu.memory_space<vmem>>, vector<1x256xf32>
    %12 = vector.broadcast %11 : vector<1x256xf32> to vector<4x256xf32>
    %13 = arith.mulf %10, %12 : vector<4x256xf32>
    %c0_8 = arith.constant 0 : index
    %c4 = arith.constant 4 : index
    %14 = vector.load %arg2[%c0_8, %c4] : memref<4x36xf32, #tpu.memory_space<vmem>>, vector<4x4xf32>
    %cst_9 = arith.constant dense<0.000000e+00> : vector<4x256xf32>
    %15 = tpu.matmul %14, %13, %cst_9 {dimension_numbers = #tpu.dot_dimension_numbers<[1], [0], [0], [1], [0, 0, 1, 1], [], []>} : vector<4x4xf32>, vector<4x256xf32>, vector<4x256xf32> -> vector<4x256xf32>
    %16 = arith.addf %9, %15 : vector<4x256xf32>
    %c15_i32 = arith.constant 15 : i32
    %17 = tpu.dynamic_rotate %1 by %c15_i32 dim 1 : vector<4x256xf32>, i32 -> vector<4x256xf32>
    %c2 = arith.constant 2 : index
    %c0_10 = arith.constant 0 : index
    %18 = vector.load %arg4[%c2, %c0_10] : memref<9x256xf32, #tpu.memory_space<vmem>>, vector<1x256xf32>
    %19 = vector.broadcast %18 : vector<1x256xf32> to vector<4x256xf32>
    %20 = arith.mulf %17, %19 : vector<4x256xf32>
    %c0_11 = arith.constant 0 : index
    %c8 = arith.constant 8 : index
    %21 = vector.load %arg2[%c0_11, %c8] : memref<4x36xf32, #tpu.memory_space<vmem>>, vector<4x4xf32>
    %cst_12 = arith.constant dense<0.000000e+00> : vector<4x256xf32>
    %22 = tpu.matmul %21, %20, %cst_12 {dimension_numbers = #tpu.dot_dimension_numbers<[1], [0], [0], [1], [0, 0, 1, 1], [], []>} : vector<4x4xf32>, vector<4x256xf32>, vector<4x256xf32> -> vector<4x256xf32>
    %23 = arith.addf %16, %22 : vector<4x256xf32>
    %c1_i32 = arith.constant 1 : i32
    %24 = tpu.dynamic_rotate %1 by %c1_i32 dim 1 : vector<4x256xf32>, i32 -> vector<4x256xf32>
    %c3 = arith.constant 3 : index
    %c0_13 = arith.constant 0 : index
    %25 = vector.load %arg4[%c3, %c0_13] : memref<9x256xf32, #tpu.memory_space<vmem>>, vector<1x256xf32>
    %26 = vector.broadcast %25 : vector<1x256xf32> to vector<4x256xf32>
    %27 = arith.mulf %24, %26 : vector<4x256xf32>
    %c0_14 = arith.constant 0 : index
    %c12 = arith.constant 12 : index
    %28 = vector.load %arg2[%c0_14, %c12] : memref<4x36xf32, #tpu.memory_space<vmem>>, vector<4x4xf32>
    %cst_15 = arith.constant dense<0.000000e+00> : vector<4x256xf32>
    %29 = tpu.matmul %28, %27, %cst_15 {dimension_numbers = #tpu.dot_dimension_numbers<[1], [0], [0], [1], [0, 0, 1, 1], [], []>} : vector<4x4xf32>, vector<4x256xf32>, vector<4x256xf32> -> vector<4x256xf32>
    %30 = arith.addf %23, %29 : vector<4x256xf32>
    %c0_16 = arith.constant 0 : index
    %c16 = arith.constant 16 : index
    %31 = vector.load %arg2[%c0_16, %c16] : memref<4x36xf32, #tpu.memory_space<vmem>>, vector<4x4xf32>
    %cst_17 = arith.constant dense<0.000000e+00> : vector<4x256xf32>
    %32 = tpu.matmul %31, %1, %cst_17 {dimension_numbers = #tpu.dot_dimension_numbers<[1], [0], [0], [1], [0, 0, 1, 1], [], []>} : vector<4x4xf32>, vector<4x256xf32>, vector<4x256xf32> -> vector<4x256xf32>
    %33 = arith.addf %30, %32 : vector<4x256xf32>
    %c255_i32 = arith.constant 255 : i32
    %34 = tpu.dynamic_rotate %1 by %c255_i32 dim 1 : vector<4x256xf32>, i32 -> vector<4x256xf32>
    %c5 = arith.constant 5 : index
    %c0_18 = arith.constant 0 : index
    %35 = vector.load %arg4[%c5, %c0_18] : memref<9x256xf32, #tpu.memory_space<vmem>>, vector<1x256xf32>
    %36 = vector.broadcast %35 : vector<1x256xf32> to vector<4x256xf32>
    %37 = arith.mulf %34, %36 : vector<4x256xf32>
    %c0_19 = arith.constant 0 : index
    %c20 = arith.constant 20 : index
    %38 = vector.load %arg2[%c0_19, %c20] : memref<4x36xf32, #tpu.memory_space<vmem>>, vector<4x4xf32>
    %cst_20 = arith.constant dense<0.000000e+00> : vector<4x256xf32>
    %39 = tpu.matmul %38, %37, %cst_20 {dimension_numbers = #tpu.dot_dimension_numbers<[1], [0], [0], [1], [0, 0, 1, 1], [], []>} : vector<4x4xf32>, vector<4x256xf32>, vector<4x256xf32> -> vector<4x256xf32>
    %40 = arith.addf %33, %39 : vector<4x256xf32>
    %c241_i32 = arith.constant 241 : i32
    %41 = tpu.dynamic_rotate %1 by %c241_i32 dim 1 : vector<4x256xf32>, i32 -> vector<4x256xf32>
    %c6 = arith.constant 6 : index
    %c0_21 = arith.constant 0 : index
    %42 = vector.load %arg4[%c6, %c0_21] : memref<9x256xf32, #tpu.memory_space<vmem>>, vector<1x256xf32>
    %43 = vector.broadcast %42 : vector<1x256xf32> to vector<4x256xf32>
    %44 = arith.mulf %41, %43 : vector<4x256xf32>
    %c0_22 = arith.constant 0 : index
    %c24 = arith.constant 24 : index
    %45 = vector.load %arg2[%c0_22, %c24] : memref<4x36xf32, #tpu.memory_space<vmem>>, vector<4x4xf32>
    %cst_23 = arith.constant dense<0.000000e+00> : vector<4x256xf32>
    %46 = tpu.matmul %45, %44, %cst_23 {dimension_numbers = #tpu.dot_dimension_numbers<[1], [0], [0], [1], [0, 0, 1, 1], [], []>} : vector<4x4xf32>, vector<4x256xf32>, vector<4x256xf32> -> vector<4x256xf32>
    %47 = arith.addf %40, %46 : vector<4x256xf32>
    %c240_i32 = arith.constant 240 : i32
    %48 = tpu.dynamic_rotate %1 by %c240_i32 dim 1 : vector<4x256xf32>, i32 -> vector<4x256xf32>
    %c7 = arith.constant 7 : index
    %c0_24 = arith.constant 0 : index
    %49 = vector.load %arg4[%c7, %c0_24] : memref<9x256xf32, #tpu.memory_space<vmem>>, vector<1x256xf32>
    %50 = vector.broadcast %49 : vector<1x256xf32> to vector<4x256xf32>
    %51 = arith.mulf %48, %50 : vector<4x256xf32>
    %c0_25 = arith.constant 0 : index
    %c28 = arith.constant 28 : index
    %52 = vector.load %arg2[%c0_25, %c28] : memref<4x36xf32, #tpu.memory_space<vmem>>, vector<4x4xf32>
    %cst_26 = arith.constant dense<0.000000e+00> : vector<4x256xf32>
    %53 = tpu.matmul %52, %51, %cst_26 {dimension_numbers = #tpu.dot_dimension_numbers<[1], [0], [0], [1], [0, 0, 1, 1], [], []>} : vector<4x4xf32>, vector<4x256xf32>, vector<4x256xf32> -> vector<4x256xf32>
    %54 = arith.addf %47, %53 : vector<4x256xf32>
    %c239_i32 = arith.constant 239 : i32
    %55 = tpu.dynamic_rotate %1 by %c239_i32 dim 1 : vector<4x256xf32>, i32 -> vector<4x256xf32>
    %c8_27 = arith.constant 8 : index
    %c0_28 = arith.constant 0 : index
    %56 = vector.load %arg4[%c8_27, %c0_28] : memref<9x256xf32, #tpu.memory_space<vmem>>, vector<1x256xf32>
    %57 = vector.broadcast %56 : vector<1x256xf32> to vector<4x256xf32>
    %58 = arith.mulf %55, %57 : vector<4x256xf32>
    %c0_29 = arith.constant 0 : index
    %c32 = arith.constant 32 : index
    %59 = vector.load %arg2[%c0_29, %c32] : memref<4x36xf32, #tpu.memory_space<vmem>>, vector<4x4xf32>
    %cst_30 = arith.constant dense<0.000000e+00> : vector<4x256xf32>
    %60 = tpu.matmul %59, %58, %cst_30 {dimension_numbers = #tpu.dot_dimension_numbers<[1], [0], [0], [1], [0, 0, 1, 1], [], []>} : vector<4x4xf32>, vector<4x256xf32>, vector<4x256xf32> -> vector<4x256xf32>
    %61 = arith.addf %54, %60 : vector<4x256xf32>
    %cst_31 = arith.constant 0.000000e+00 : f32
    %62 = vector.broadcast %cst_31 : f32 to vector<4x256xf32>
    %63 = arith.maximumf %61, %62 : vector<4x256xf32>
    %cst_32 = arith.constant 0.000000e+00 : f32
    %64 = vector.broadcast %cst_32 : f32 to vector<4x256xf32>
    %c17_i32_33 = arith.constant 17 : i32
    %65 = tpu.dynamic_rotate %63 by %c17_i32_33 dim 1 : vector<4x256xf32>, i32 -> vector<4x256xf32>
    %c0_34 = arith.constant 0 : index
    %c0_35 = arith.constant 0 : index
    %66 = vector.load %arg4[%c0_34, %c0_35] : memref<9x256xf32, #tpu.memory_space<vmem>>, vector<1x256xf32>
    %67 = vector.broadcast %66 : vector<1x256xf32> to vector<4x256xf32>
    %68 = arith.mulf %65, %67 : vector<4x256xf32>
    %c0_36 = arith.constant 0 : index
    %c0_37 = arith.constant 0 : index
    %69 = vector.load %arg3[%c0_36, %c0_37] : memref<4x36xf32, #tpu.memory_space<vmem>>, vector<4x4xf32>
    %cst_38 = arith.constant dense<0.000000e+00> : vector<4x256xf32>
    %70 = tpu.matmul %69, %68, %cst_38 {dimension_numbers = #tpu.dot_dimension_numbers<[1], [0], [0], [1], [0, 0, 1, 1], [], []>} : vector<4x4xf32>, vector<4x256xf32>, vector<4x256xf32> -> vector<4x256xf32>
    %71 = arith.addf %64, %70 : vector<4x256xf32>
    %c16_i32_39 = arith.constant 16 : i32
    %72 = tpu.dynamic_rotate %63 by %c16_i32_39 dim 1 : vector<4x256xf32>, i32 -> vector<4x256xf32>
    %c1_40 = arith.constant 1 : index
    %c0_41 = arith.constant 0 : index
    %73 = vector.load %arg4[%c1_40, %c0_41] : memref<9x256xf32, #tpu.memory_space<vmem>>, vector<1x256xf32>
    %74 = vector.broadcast %73 : vector<1x256xf32> to vector<4x256xf32>
    %75 = arith.mulf %72, %74 : vector<4x256xf32>
    %c0_42 = arith.constant 0 : index
    %c4_43 = arith.constant 4 : index
    %76 = vector.load %arg3[%c0_42, %c4_43] : memref<4x36xf32, #tpu.memory_space<vmem>>, vector<4x4xf32>
    %cst_44 = arith.constant dense<0.000000e+00> : vector<4x256xf32>
    %77 = tpu.matmul %76, %75, %cst_44 {dimension_numbers = #tpu.dot_dimension_numbers<[1], [0], [0], [1], [0, 0, 1, 1], [], []>} : vector<4x4xf32>, vector<4x256xf32>, vector<4x256xf32> -> vector<4x256xf32>
    %78 = arith.addf %71, %77 : vector<4x256xf32>
    %c15_i32_45 = arith.constant 15 : i32
    %79 = tpu.dynamic_rotate %63 by %c15_i32_45 dim 1 : vector<4x256xf32>, i32 -> vector<4x256xf32>
    %c2_46 = arith.constant 2 : index
    %c0_47 = arith.constant 0 : index
    %80 = vector.load %arg4[%c2_46, %c0_47] : memref<9x256xf32, #tpu.memory_space<vmem>>, vector<1x256xf32>
    %81 = vector.broadcast %80 : vector<1x256xf32> to vector<4x256xf32>
    %82 = arith.mulf %79, %81 : vector<4x256xf32>
    %c0_48 = arith.constant 0 : index
    %c8_49 = arith.constant 8 : index
    %83 = vector.load %arg3[%c0_48, %c8_49] : memref<4x36xf32, #tpu.memory_space<vmem>>, vector<4x4xf32>
    %cst_50 = arith.constant dense<0.000000e+00> : vector<4x256xf32>
    %84 = tpu.matmul %83, %82, %cst_50 {dimension_numbers = #tpu.dot_dimension_numbers<[1], [0], [0], [1], [0, 0, 1, 1], [], []>} : vector<4x4xf32>, vector<4x256xf32>, vector<4x256xf32> -> vector<4x256xf32>
    %85 = arith.addf %78, %84 : vector<4x256xf32>
    %c1_i32_51 = arith.constant 1 : i32
    %86 = tpu.dynamic_rotate %63 by %c1_i32_51 dim 1 : vector<4x256xf32>, i32 -> vector<4x256xf32>
    %c3_52 = arith.constant 3 : index
    %c0_53 = arith.constant 0 : index
    %87 = vector.load %arg4[%c3_52, %c0_53] : memref<9x256xf32, #tpu.memory_space<vmem>>, vector<1x256xf32>
    %88 = vector.broadcast %87 : vector<1x256xf32> to vector<4x256xf32>
    %89 = arith.mulf %86, %88 : vector<4x256xf32>
    %c0_54 = arith.constant 0 : index
    %c12_55 = arith.constant 12 : index
    %90 = vector.load %arg3[%c0_54, %c12_55] : memref<4x36xf32, #tpu.memory_space<vmem>>, vector<4x4xf32>
    %cst_56 = arith.constant dense<0.000000e+00> : vector<4x256xf32>
    %91 = tpu.matmul %90, %89, %cst_56 {dimension_numbers = #tpu.dot_dimension_numbers<[1], [0], [0], [1], [0, 0, 1, 1], [], []>} : vector<4x4xf32>, vector<4x256xf32>, vector<4x256xf32> -> vector<4x256xf32>
    %92 = arith.addf %85, %91 : vector<4x256xf32>
    %c0_57 = arith.constant 0 : index
    %c16_58 = arith.constant 16 : index
    %93 = vector.load %arg3[%c0_57, %c16_58] : memref<4x36xf32, #tpu.memory_space<vmem>>, vector<4x4xf32>
    %cst_59 = arith.constant dense<0.000000e+00> : vector<4x256xf32>
    %94 = tpu.matmul %93, %63, %cst_59 {dimension_numbers = #tpu.dot_dimension_numbers<[1], [0], [0], [1], [0, 0, 1, 1], [], []>} : vector<4x4xf32>, vector<4x256xf32>, vector<4x256xf32> -> vector<4x256xf32>
    %95 = arith.addf %92, %94 : vector<4x256xf32>
    %c255_i32_60 = arith.constant 255 : i32
    %96 = tpu.dynamic_rotate %63 by %c255_i32_60 dim 1 : vector<4x256xf32>, i32 -> vector<4x256xf32>
    %c5_61 = arith.constant 5 : index
    %c0_62 = arith.constant 0 : index
    %97 = vector.load %arg4[%c5_61, %c0_62] : memref<9x256xf32, #tpu.memory_space<vmem>>, vector<1x256xf32>
    %98 = vector.broadcast %97 : vector<1x256xf32> to vector<4x256xf32>
    %99 = arith.mulf %96, %98 : vector<4x256xf32>
    %c0_63 = arith.constant 0 : index
    %c20_64 = arith.constant 20 : index
    %100 = vector.load %arg3[%c0_63, %c20_64] : memref<4x36xf32, #tpu.memory_space<vmem>>, vector<4x4xf32>
    %cst_65 = arith.constant dense<0.000000e+00> : vector<4x256xf32>
    %101 = tpu.matmul %100, %99, %cst_65 {dimension_numbers = #tpu.dot_dimension_numbers<[1], [0], [0], [1], [0, 0, 1, 1], [], []>} : vector<4x4xf32>, vector<4x256xf32>, vector<4x256xf32> -> vector<4x256xf32>
    %102 = arith.addf %95, %101 : vector<4x256xf32>
    %c241_i32_66 = arith.constant 241 : i32
    %103 = tpu.dynamic_rotate %63 by %c241_i32_66 dim 1 : vector<4x256xf32>, i32 -> vector<4x256xf32>
    %c6_67 = arith.constant 6 : index
    %c0_68 = arith.constant 0 : index
    %104 = vector.load %arg4[%c6_67, %c0_68] : memref<9x256xf32, #tpu.memory_space<vmem>>, vector<1x256xf32>
    %105 = vector.broadcast %104 : vector<1x256xf32> to vector<4x256xf32>
    %106 = arith.mulf %103, %105 : vector<4x256xf32>
    %c0_69 = arith.constant 0 : index
    %c24_70 = arith.constant 24 : index
    %107 = vector.load %arg3[%c0_69, %c24_70] : memref<4x36xf32, #tpu.memory_space<vmem>>, vector<4x4xf32>
    %cst_71 = arith.constant dense<0.000000e+00> : vector<4x256xf32>
    %108 = tpu.matmul %107, %106, %cst_71 {dimension_numbers = #tpu.dot_dimension_numbers<[1], [0], [0], [1], [0, 0, 1, 1], [], []>} : vector<4x4xf32>, vector<4x256xf32>, vector<4x256xf32> -> vector<4x256xf32>
    %109 = arith.addf %102, %108 : vector<4x256xf32>
    %c240_i32_72 = arith.constant 240 : i32
    %110 = tpu.dynamic_rotate %63 by %c240_i32_72 dim 1 : vector<4x256xf32>, i32 -> vector<4x256xf32>
    %c7_73 = arith.constant 7 : index
    %c0_74 = arith.constant 0 : index
    %111 = vector.load %arg4[%c7_73, %c0_74] : memref<9x256xf32, #tpu.memory_space<vmem>>, vector<1x256xf32>
    %112 = vector.broadcast %111 : vector<1x256xf32> to vector<4x256xf32>
    %113 = arith.mulf %110, %112 : vector<4x256xf32>
    %c0_75 = arith.constant 0 : index
    %c28_76 = arith.constant 28 : index
    %114 = vector.load %arg3[%c0_75, %c28_76] : memref<4x36xf32, #tpu.memory_space<vmem>>, vector<4x4xf32>
    %cst_77 = arith.constant dense<0.000000e+00> : vector<4x256xf32>
    %115 = tpu.matmul %114, %113, %cst_77 {dimension_numbers = #tpu.dot_dimension_numbers<[1], [0], [0], [1], [0, 0, 1, 1], [], []>} : vector<4x4xf32>, vector<4x256xf32>, vector<4x256xf32> -> vector<4x256xf32>
    %116 = arith.addf %109, %115 : vector<4x256xf32>
    %c239_i32_78 = arith.constant 239 : i32
    %117 = tpu.dynamic_rotate %63 by %c239_i32_78 dim 1 : vector<4x256xf32>, i32 -> vector<4x256xf32>
    %c8_79 = arith.constant 8 : index
    %c0_80 = arith.constant 0 : index
    %118 = vector.load %arg4[%c8_79, %c0_80] : memref<9x256xf32, #tpu.memory_space<vmem>>, vector<1x256xf32>
    %119 = vector.broadcast %118 : vector<1x256xf32> to vector<4x256xf32>
    %120 = arith.mulf %117, %119 : vector<4x256xf32>
    %c0_81 = arith.constant 0 : index
    %c32_82 = arith.constant 32 : index
    %121 = vector.load %arg3[%c0_81, %c32_82] : memref<4x36xf32, #tpu.memory_space<vmem>>, vector<4x4xf32>
    %cst_83 = arith.constant dense<0.000000e+00> : vector<4x256xf32>
    %122 = tpu.matmul %121, %120, %cst_83 {dimension_numbers = #tpu.dot_dimension_numbers<[1], [0], [0], [1], [0, 0, 1, 1], [], []>} : vector<4x4xf32>, vector<4x256xf32>, vector<4x256xf32> -> vector<4x256xf32>
    %123 = arith.addf %116, %122 : vector<4x256xf32>
    %124 = arith.addf %1, %123 : vector<4x256xf32>
    %c0_84 = arith.constant 0 : index
    %c0_85 = arith.constant 0 : index
    %c0_86 = arith.constant 0 : index
    %125 = vector.load %arg5[%c0_84, %c0_85, %c0_86] : memref<1x4x256xf32, #tpu.memory_space<vmem>>, vector<1x4x256xf32>
    %126 = vector.shape_cast %125 : vector<1x4x256xf32> to vector<4x256xf32>
    %127 = vector.shape_cast %124 : vector<4x256xf32> to vector<1x4x256xf32>
    tpu.vector_store %arg5[%c0_84, %c0_85, %c0_86], %127 {strides = array<i32>} : memref<1x4x256xf32, #tpu.memory_space<vmem>>, vector<1x4x256xf32>,
    return
  }
  func.func @transform_0(%arg0: i32) -> (i32, i32, i32) {
    %c0_i32 = arith.constant 0 : i32
    %c0_i32_0 = arith.constant 0 : i32
    %c0_i32_1 = arith.constant 0 : i32
    return %arg0, %c0_i32, %c0_i32_0 : i32, i32, i32
  }
  func.func @transform_1(%arg0: i32) -> (i32, i32) {
    %c0_i32 = arith.constant 0 : i32
    %c0_i32_0 = arith.constant 0 : i32
    %c0_i32_1 = arith.constant 0 : i32
    return %c0_i32, %c0_i32_0 : i32, i32
  }
  func.func @transform_2(%arg0: i32) -> (i32, i32) {
    %c0_i32 = arith.constant 0 : i32
    %c0_i32_0 = arith.constant 0 : i32
    %c0_i32_1 = arith.constant 0 : i32
    return %c0_i32, %c0_i32_0 : i32, i32
  }
  func.func @transform_3(%arg0: i32) -> (i32, i32) {
    %c0_i32 = arith.constant 0 : i32
    %c0_i32_0 = arith.constant 0 : i32
    %c0_i32_1 = arith.constant 0 : i32
    return %c0_i32, %c0_i32_0 : i32, i32
  }
  func.func @transform_4(%arg0: i32) -> (i32, i32, i32) {
    %c0_i32 = arith.constant 0 : i32
    %c0_i32_0 = arith.constant 0 : i32
    %c0_i32_1 = arith.constant 0 : i32
    return %arg0, %c0_i32, %c0_i32_0 : i32, i32, i32
  }
}

</mosaic_0001>

<bundles_post_ra>
// kernel: br_forward.1
= control target key start
LH: loop header
LB: loop body
LE: loop exit
PB: predicated region body
PF: predicated region fallthrough
CT: control target
= control target key end

     0   :  { %s2184_s15 = smov 0   ;;  %s2585_s0 = inlined_call_operand.vmem [shape: f32[2,4,256], index: 0, kind: input, shape index: {}]   ;;  %s2586_s1 = inlined_call_operand.vmem [shape: f32[4,36], index: 1, kind: input, shape index: {}]   ;;  %s2587_s2 = inlined_call_operand.vmem [shape: f32[4,36], index: 2, kind: input, shape index: {}]   ;;  %s2588_s3 = inlined_call_operand.vmem [shape: f32[9,256], index: 3, kind: input, shape index: {}]   ;;  %s2589_s4 = inlined_call_operand.vmem [shape: f32[2,4,256], index: 4, kind: output, shape index: {}]  }
   0x1 LB: > { %s2004_s16 = sadd.s32 4294967295, %s2141_s15   ;;  %p2008_p0 = scmp.ge.s32.totalorder %s2141_s15, 1  ;;  %s2141_s15 = sphi %s2184_s15, %s14_s15  }
   0x2   : > { %p162_p1 = scmp.lt.s32.totalorder %s2141_s15, 3 }
   0x4   : > { %p163_p2 = pnand %p2008_p0, %p162_p1 }
   0x5   : > { %p188_p3 = scmp.lt.s32.totalorder (!%p163_p2), %s2004_s16, 1  ;;  %v2195_v0 = vld [vmem:[%s2586_s1] sm:$0xf] (!%p163_p2)  ;;  %s2143_s19 = smov (!%p163_p2), 124   ;;  %v2144_v2 = vmov (!%p163_p2), 0.0   ;;  %v206_v10 = vlaneseq (!%p163_p2)  ;;  %vm254_vm1 = vcmask (!%p163_p2), 1043456  }
   0x6   : > { %166 = sbr.rel (%p163_p2) target bundleno = 822 (0x336), region = 36  ;;  %249 = vrot.lane.b32.xlu1 (!%p163_p2), %v2195_v0, %s2143_s19  ;;  %325 = vmatprep.mubr.f32.mxu0 (!%p163_p2), %v2144_v2  ;;  %s2145_s24 = smov (!%p163_p2), 16   ;;  %v433_v4 = vld [vmem:[%s2586_s1] sm:$0xf] (!%p163_p2)  ;;  %vm251_vm3 = vcmask (!%p163_p2), 31744  }
   0x7   : > { %1228 = vmatprep.mubr.f32.mxu1 (!%p163_p2), %v2144_v2  ;;  %s2146_s25 = smov (!%p163_p2), 17   ;;  %s2147_s26 = smov (!%p163_p2), 15   ;;  %v540_v5 = vld [vmem:[%s2586_s1] sm:$0xf] (!%p163_p2)  ;;  %v214_v11 = vshrl.u32 (!%p163_p2), %v206_v10, 7  ;;  %v2272_v13 = vand.u32 (!%p163_p2), 127, %v206_v10 }
   0x8   : > { %s2148_s29 = smov (!%p163_p2), 120   ;;  %s2149_s30 = smov (!%p163_p2), 1   ;;  %v728_v6 = vld [vmem:[%s2586_s1] sm:$0xf] (!%p163_p2) }
   0x9   : > { %s2150_s7 = smov (!%p163_p2), 112   ;;  %s2151_s8 = smov (!%p163_p2), 116   ;;  %v835_v7 = vld [vmem:[%s2586_s1] sm:$0xf] (!%p163_p2)  ;;  %v2274_v14 = vsub.s32 (!%p163_p2), 0, %v214_v11  ;;  %v2276_v15 = vsub.s32 (!%p163_p2), 1, %v214_v11 }
   0xa   : > { %s2152_s9 = smov (!%p163_p2), 127   ;;  %s2153_s10 = smov (!%p163_p2), 113   ;;  %v942_v8 = vld [vmem:[%s2586_s1] sm:$0xf] (!%p163_p2)  ;;  %vm230_vm0 = vcmp.lt.s32.totalorder (!%p163_p2), %v2272_v13, 16  ;;  %vm208_vm2 = vcmp.lt.s32.totalorder (!%p163_p2), %v2272_v13, 17 }
   0xb   : > { %s2154_s17 = smov (!%p163_p2), 108   ;;  %s2155_s18 = smov (!%p163_p2), 104   ;;  %v1049_v9 = vld [vmem:[%s2586_s1] sm:$0xf] (!%p163_p2)  ;;  %vm415_vm4 = vcmp.lt.s32.totalorder (!%p163_p2), %v2272_v13, 15  ;;  %vm522_vm5 = vcmp.lt.s32.totalorder (!%p163_p2), %v2272_v13, 1 }
   0xc   : > { %s2156_s21 = smov (!%p163_p2), 111   ;;  %s2157_s5 = smov (!%p163_p2), 100   ;;  %v2013_v16 = vld [vmem:[%s2588_s3 + $0x1] ss:$8 sm:$0x3] (!%p163_p2)  ;;  %vm710_vm6 = vcmp.lt.s32.totalorder (!%p163_p2), %v2272_v13, 127 }
   0xd   : > { %s2591_s16 = smov (!%p188_p3, %s2004_s16), 1  ;;  %s2158_s6 = smov 96   ;;  %v2283_v19 = vrot.slane %v2013_v16, %v2274_v14  ;;  %v2286_v20 = vrot.slane %v2013_v16, %v2276_v15  ;;  %v211_v21 = vld [vmem:[%s2588_s3] ss:$8 sm:$0x3]  ;;  %vm817_vm7 = vcmp.lt.s32.totalorder %v2272_v13, 113 }
   0xe   : > { %s2076_s20 = sshll.u32 %s2591_s16, 3  ;;  %v2299_v28 = vrot.slane %v211_v21, %v2274_v14  ;;  %v2302_v29 = vrot.slane %v211_v21, %v2276_v15  ;;  %v2020_v30 = vld [vmem:[%s2588_s3 + $0x2] ss:$8 sm:$0x3]  ;;  %vm924_vm8 = vcmp.lt.s32.totalorder %v2272_v13, 112  ;;  %vm1031_vm9 = vcmp.lt.s32.totalorder %v2272_v13, 111 }
   0xf   : > { %s192_s23 = scalar_lea.vmem %s2585_s0, %s2076_s20  ;;  %v2318_v37 = vrot.slane %v2020_v30, %v2276_v15  ;;  %v2322_v38 = vrot.slane %v2020_v30, %v2274_v14  ;;  %v2024_v39 = vld [vmem:[%s2588_s3 + $0x3] ss:$8 sm:$0x3]  ;;  %v2031_v56 = vld [vmem:[%s2588_s3 + $0x5] ss:$8 sm:$0x3] }
  0x10   : > { %v2207_v1 = vld [vmem:[%s192_s23] sm:$0xff]  ;;  %v2336_v45 = vrot.slane %v2024_v39, %v2276_v15  ;;  %v2348_v50 = vrot.slane %v2024_v39, %v2274_v14  ;;  %v2364_v58 = vrot.slane %v2031_v56, %v2276_v15 }
  0x11   : > { %226 = vrot.lane.b32.xlu0 %v2207_v1, %s2145_s24  ;;  %v2215_v3 = vcombine.high %v2207_v1, %v2207_v1  ;;  %202 = vrot.lane.b32.xlu1 %v2207_v1, %s2146_s25  ;;  %v2035_v63 = vld [vmem:[%s2588_s3 + $0x6] ss:$8 sm:$0x3]  ;;  %v2039_v11 = vld [vmem:[%s2588_s3 + $0x7] ss:$8 sm:$0x3] }
  0x12   : > { %v2398_v16 = vrot.slane %v2035_v63, %v2274_v14  ;;  %v2418_v30 = vrot.slane %v2039_v11, %v2274_v14 }
  0x15   : > { %228 = vrot.lane.b32.xlu0 %v2215_v3, %s2145_s24  ;;  %411 = vrot.lane.b32.xlu1 %v2207_v1, %s2147_s26 }
  0x19   : > { %204 = vrot.lane.b32.xlu0 %v2215_v3, %s2146_s25  ;;  %435 = vrot.lane.b32.xlu1 %v433_v4, %s2148_s29 }
  0x1d   : > { %413 = vrot.lane.b32.xlu0 %v2215_v3, %s2147_s26  ;;  %520 = vrot.lane.b32.xlu1 %v2215_v3, %s2149_s30 }
  0x21   : > { %518 = vrot.lane.b32.xlu0 %v2207_v1, %s2149_s30  ;;  %625 = vrot.lane.b32.xlu1 %v540_v5, %s2150_s7 }
  0x25   : > { %542 = vrot.lane.b32.xlu0 %v540_v5, %s2151_s8  ;;  %708 = vrot.lane.b32.xlu1 %v2215_v3, %s2152_s9  ;;  %v2384_v5 = vrot.slane %v2035_v63, %v2276_v15 }
  0x29   : > { %706 = vrot.lane.b32.xlu0 %v2207_v1, %s2152_s9  ;;  %813 = vrot.lane.b32.xlu1 %v2207_v1, %s2153_s10 }
  0x2d   : > { %730 = vrot.lane.b32.xlu0 %v728_v6, %s2154_s17  ;;  %837 = vrot.lane.b32.xlu1 %v835_v7, %s2155_s18 }
  0x31   : > { %815 = vrot.lane.b32.xlu0 %v2215_v3, %s2153_s10  ;;  %922 = vrot.lane.b32.xlu1 %v2215_v3, %s2150_s7 }
  0x35   : > { %920 = vrot.lane.b32.xlu0 %v2207_v1, %s2150_s7  ;;  %1027 = vrot.lane.b32.xlu1 %v2207_v1, %s2156_s21 }
  0x39   : > { %944 = vrot.lane.b32.xlu0 %v942_v8, %s2157_s5  ;;  %1051 = vrot.lane.b32.xlu1 %v1049_v9, %s2158_s6 }
  0x3d   : > { %1029 = vrot.lane.b32.xlu0 %v2215_v3, %s2156_s21 }
  0x78   : > { %v250_v12 = vpop.permute.xlu1 %249 }
  0x83   : > { %v227_v17 = vpop.permute.xlu0 %226  ;;  %v203_v18 = vpop.permute.xlu1 %202 }
  0x87   : > { %v229_v22 = vpop.permute.xlu0 %228  ;;  %v412_v23 = vpop.permute.xlu1 %411 }
  0x88   : > { %v231_v24 = vsel %vm230_vm0, %v227_v17, %v229_v22  ;;  %v232_v25 = vsel %vm230_vm0, %v229_v22, %v227_v17 }
  0x89   : > { %v246_v26 = vmul.f32 %v2283_v19, %v232_v25  ;;  %v247_v27 = vmul.f32 %v2286_v20, %v231_v24  ;;  %v2043_v25 = vld [vmem:[%s2588_s3 + $0x10] ss:$8 sm:$0x3] }
  0x8b   : > { %2014 = vmatprep.subr.msk.mxu0 %vm254_vm1, %v247_v27  ;;  %v205_v31 = vpop.permute.xlu0 %204  ;;  %v436_v32 = vpop.permute.xlu1 %435 }
  0x8c   : > { %2015 = vmatpush1.msk.msra.mxu0 %vm254_vm1, %v246_v26  ;;  %v209_v33 = vsel %vm208_vm2, %v203_v18, %v205_v31  ;;  %v210_v34 = vsel %vm208_vm2, %v205_v31, %v203_v18  ;;  %v2404_v18 = vrot.slane %v2039_v11, %v2276_v15 }
  0x8d   : > { %2016 = vmatmul.mubr.msk.f32.vlgmr.msra.gmra.mrb[0].mxu0 %vm251_vm3, %v250_v12  ;;  %v223_v35 = vmul.f32 %v2299_v28, %v210_v34  ;;  %v224_v36 = vmul.f32 %v2302_v29, %v209_v33 }
  0x8e   : > { %404 = vmatprep.mubr.f32.mxu0 %v2144_v2 }
  0x8f   : > { %2017 = vmatprep.subr.msk.mxu0 %vm254_vm1, %v224_v36  ;;  %v414_v40 = vpop.permute.xlu0 %413  ;;  %v521_v44 = vpop.permute.xlu1 %520  ;;  %v2434_v36 = vrot.slane %v2043_v25, %v2274_v14 }
  0x90   : > { %2018 = vmatpush1.msk.msra.mxu0 %vm254_vm1, %v223_v35  ;;  %v416_v41 = vsel %vm415_vm4, %v412_v23, %v414_v40  ;;  %v417_v42 = vsel %vm415_vm4, %v414_v40, %v412_v23 }
  0x91   : > { %v432_v43 = vmul.f32 %v2318_v37, %v416_v41  ;;  %v431_v46 = vmul.f32 %v2322_v38, %v417_v42 }
  0x93   : > { %2021 = vmatprep.subr.msk.mxu0 %vm254_vm1, %v432_v43  ;;  %v519_v47 = vpop.permute.xlu0 %518  ;;  %v626_v53 = vpop.permute.xlu1 %625 }
  0x94   : > { %v523_v48 = vsel %vm522_vm5, %v519_v47, %v521_v44  ;;  %v524_v51 = vsel %vm522_vm5, %v521_v44, %v519_v47  ;;  %v1144_v44 = vld [vmem:[%s2587_s2] sm:$0xf] }
  0x95   : > { %2019 = vmatmul.mubr.msk.f32.vlgmr.msra.gmra.mrb[0].mxu0 %vm251_vm3, %v2195_v0  ;;  %v539_v49 = vmul.f32 %v2336_v45, %v523_v48  ;;  %v538_v54 = vmul.f32 %v2348_v50, %v524_v51 }
  0x96   : > { %2022 = vmatpush1.msk.msra.mxu0 %vm254_vm1, %v431_v46  ;;  %509 = vmatprep.mubr.f32.mxu0 %v2144_v2 }
  0x97   : > { %2025 = vmatprep.subr.msk.mxu0 %vm254_vm1, %v539_v49  ;;  %v543_v52 = vpop.permute.xlu0 %542  ;;  %v709_v57 = vpop.permute.xlu1 %708 }
  0x9b   : > { %v707_v55 = vpop.permute.xlu0 %706  ;;  %v814_v61 = vpop.permute.xlu1 %813 }
  0x9c   : > { %v712_v60 = vsel %vm710_vm6, %v709_v57, %v707_v55  ;;  %v711_v4 = vsel %vm710_vm6, %v707_v55, %v709_v57 }
  0x9d   : > { %2023 = vmatmul.mubr.msk.f32.vlgmr.msra.gmra.mrb[0].mxu0 %vm251_vm3, %v436_v32  ;;  %v727_v62 = vmul.f32 %v2364_v58, %v712_v60  ;;  %v2424_v32 = vrot.slane %v2043_v25, %v2276_v15 }
  0x9e   : > { %2026 = vmatpush1.msk.msra.mxu0 %vm254_vm1, %v538_v54  ;;  %616 = vmatprep.mubr.f32.mxu0 %v2144_v2 }
  0x9f   : > { %2028 = vmatprep.subr.msk.mxu0 %vm254_vm1, %v2215_v3  ;;  %v731_v59 = vpop.permute.xlu0 %730  ;;  %v2378_v3 = vrot.slane %v2031_v56, %v2274_v14  ;;  %v838_v6 = vpop.permute.xlu1 %837 }
  0xa1   : > { %v726_v9 = vmul.f32 %v2378_v3, %v711_v4 }
  0xa3   : > { %v816_v0 = vpop.permute.xlu0 %815  ;;  %v923_v12 = vpop.permute.xlu1 %922 }
  0xa4   : > { %v819_v7 = vsel %vm817_vm7, %v816_v0, %v814_v61  ;;  %v818_v17 = vsel %vm817_vm7, %v814_v61, %v816_v0 }
  0xa5   : > { %2027 = vmatmul.mubr.msk.f32.vlgmr.msra.gmra.mrb[0].mxu0 %vm251_vm3, %v543_v52  ;;  %v834_v10 = vmul.f32 %v2384_v5, %v819_v7  ;;  %v833_v23 = vmul.f32 %v2398_v16, %v818_v17 }
  0xa6   : > { %2029 = vmatpush1.msk.msra.mxu0 %vm254_vm1, %v2207_v1  ;;  %697 = vmatprep.mubr.f32.mxu0 %v2144_v2 }
  0xa7   : > { %2032 = vmatprep.subr.msk.mxu0 %vm254_vm1, %v727_v62  ;;  %v921_v8 = vpop.permute.xlu0 %920  ;;  %v1028_v26 = vpop.permute.xlu1 %1027 }
  0xa8   : > { %v926_v22 = vsel %vm924_vm8, %v923_v12, %v921_v8  ;;  %v925_v31 = vsel %vm924_vm8, %v921_v8, %v923_v12 }
  0xa9   : > { %v941_v24 = vmul.f32 %v2404_v18, %v926_v22  ;;  %v940_v34 = vmul.f32 %v2418_v30, %v925_v31 }
  0xab   : > { %v945_v21 = vpop.permute.xlu0 %944  ;;  %v1052_v40 = vpop.permute.xlu1 %1051 }
  0xad   : > { %2030 = vmatmul.mubr.msk.f32.vlgmr.msra.gmra.mrb[0].mxu0 %vm251_vm3, %v626_v53 }
  0xae   : > { %2033 = vmatpush1.msk.msra.mxu0 %vm254_vm1, %v726_v9  ;;  %804 = vmatprep.mubr.f32.mxu0 %v2144_v2 }
  0xaf   : > { %2036 = vmatprep.subr.msk.mxu0 %vm254_vm1, %v834_v10  ;;  %v1030_v27 = vpop.permute.xlu0 %1029 }
  0xb0   : > { %v1033_v33 = vsel %vm1031_vm9, %v1030_v27, %v1028_v26  ;;  %v1032_v15 = vsel %vm1031_vm9, %v1028_v26, %v1030_v27 }
  0xb1   : > { %v1048_v35 = vmul.f32 %v2424_v32, %v1033_v33  ;;  %v1047_v39 = vmul.f32 %v2434_v36, %v1032_v15 }
  0xb5   : > { %2034 = vmatmul.mubr.msk.f32.vlgmr.msra.gmra.mrb[0].mxu0 %vm251_vm3, %v731_v59 }
  0xb6   : > { %2037 = vmatpush1.msk.msra.mxu0 %vm254_vm1, %v833_v23  ;;  %911 = vmatprep.mubr.f32.mxu0 %v2144_v2 }
  0xb7   : > { %2040 = vmatprep.subr.msk.mxu0 %vm254_vm1, %v941_v24 }
  0xbd   : > { %2038 = vmatmul.mubr.msk.f32.vlgmr.msra.gmra.mrb[0].mxu0 %vm251_vm3, %v838_v6 }
  0xbe   : > { %2041 = vmatpush1.msk.msra.mxu0 %vm254_vm1, %v940_v34  ;;  %1018 = vmatprep.mubr.f32.mxu0 %v2144_v2 }
  0xbf   : > { %2044 = vmatprep.subr.msk.mxu0 %vm254_vm1, %v1048_v35 }
  0xc5   : > { %2042 = vmatmul.mubr.msk.f32.vlgmr.msra.gmra.mrb[0].mxu0 %vm251_vm3, %v945_v21 }
  0xc6   : > { %2045 = vmatpush1.msk.msra.mxu0 %vm254_vm1, %v1047_v39  ;;  %1125 = vmatprep.mubr.f32.mxu0 %v2144_v2 }
  0xcd   : > { %2046 = vmatmul.mubr.msk.f32.vlgmr.msra.gmra.mrb[0].mxu0 %vm251_vm3, %v1052_v40 }
 0x1a0   : > { %v1127_v41 = vpop.f32.mrb[0].mxu0 }
 0x1a1   : > { %v2444_v42 = vmax.f32 %v1127_v41, 0.0  ;;  %v1129_v14 = vpop.f32.mrb[1].mxu0 }
 0x1a2   : > { %v2446_v43 = vmax.f32 %v1129_v14, 0.0 }
 0x1a3   : > { %1145 = vrot.lane.b32.xlu0 %v2444_v42, %s2145_s24 }
 0x1a4   : > { %1147 = vrot.lane.b32.xlu1 %v2446_v43, %s2145_s24 }
 0x1a7   : > { %1154 = vrot.lane.b32.xlu0 %v1144_v44, %s2143_s19 }
 0x1a8   : > { %1136 = vrot.lane.b32.xlu1 %v2444_v42, %s2146_s25 }
 0x1ab   : > { %1138 = vrot.lane.b32.xlu0 %v2446_v43, %s2146_s25  ;;  %s197_s25 = scalar_lea.vmem %s2589_s4, %s2076_s20 }
 0x1ac   : > { %1314 = vrot.lane.b32.xlu1 %v2444_v42, %s2147_s26 }
 0x1af   : > { %1316 = vrot.lane.b32.xlu0 %v2446_v43, %s2147_s26 }
 0x1b0   : > { %1322 = vrot.lane.b32.xlu1 %v1144_v44, %s2148_s29 }
 0x1b3   : > { %1405 = vrot.lane.b32.xlu0 %v2444_v42, %s2149_s30 }
 0x1b4   : > { %1407 = vrot.lane.b32.xlu1 %v2446_v43, %s2149_s30 }
 0x1b7   : > { %1413 = vrot.lane.b32.xlu0 %v1144_v44, %s2151_s8 }
 0x1b8   : > { %1496 = vrot.lane.b32.xlu1 %v1144_v44, %s2150_s7 }
 0x1bb   : > { %1579 = vrot.lane.b32.xlu0 %v2444_v42, %s2152_s9 }
 0x1bc   : > { %1581 = vrot.lane.b32.xlu1 %v2446_v43, %s2152_s9 }
 0x1bf   : > { %1587 = vrot.lane.b32.xlu0 %v1144_v44, %s2154_s17 }
 0x1c0   : > { %1670 = vrot.lane.b32.xlu1 %v2444_v42, %s2153_s10 }
 0x1c3   : > { %1672 = vrot.lane.b32.xlu0 %v2446_v43, %s2153_s10 }
 0x1c4   : > { %1678 = vrot.lane.b32.xlu1 %v1144_v44, %s2155_s18 }
 0x1c7   : > { %1761 = vrot.lane.b32.xlu0 %v2444_v42, %s2150_s7 }
 0x1c8   : > { %1763 = vrot.lane.b32.xlu1 %v2446_v43, %s2150_s7 }
 0x1cb   : > { %1769 = vrot.lane.b32.xlu0 %v1144_v44, %s2157_s5 }
 0x1cc   : > { %1852 = vrot.lane.b32.xlu1 %v2444_v42, %s2156_s21 }
 0x1cf   : > { %1854 = vrot.lane.b32.xlu0 %v2446_v43, %s2156_s21 }
 0x1d0   : > { %1860 = vrot.lane.b32.xlu1 %v1144_v44, %s2158_s6 }
 0x215   : > { %v1146_v46 = vpop.permute.xlu0 %1145 }
 0x216   : > { %v1148_v47 = vpop.permute.xlu1 %1147 }
 0x217   : > { %v1149_v48 = vsel %vm230_vm0, %v1146_v46, %v1148_v47  ;;  %v1150_v49 = vsel %vm230_vm0, %v1148_v47, %v1146_v46 }
 0x218   : > { %v1151_v51 = vmul.f32 %v1150_v49, %v2283_v19  ;;  %v1152_v52 = vmul.f32 %v1149_v48, %v2286_v20 }
 0x219   : > { %v1155_v53 = vpop.permute.xlu0 %1154 }
 0x21a   : > { %2047 = vmatprep.subr.msk.mxu1 %vm254_vm1, %v1152_v52  ;;  %v1137_v54 = vpop.permute.xlu1 %1136 }
 0x21b   : > { %2048 = vmatpush1.msk.msra.mxu1 %vm254_vm1, %v1151_v51 }
 0x21c   : > { %2049 = vmatmul.mubr.msk.f32.vlgmr.msra.gmra.mrb[0].mxu1 %vm251_vm3, %v1155_v53 }
 0x21d   : > { %v1139_v55 = vpop.permute.xlu0 %1138  ;;  %1307 = vmatprep.mubr.f32.mxu1 %v2144_v2 }
 0x21e   : > { %v1140_v56 = vsel %vm208_vm2, %v1137_v54, %v1139_v55  ;;  %v1141_v57 = vsel %vm208_vm2, %v1139_v55, %v1137_v54  ;;  %v1315_v19 = vpop.permute.xlu1 %1314 }
 0x21f   : > { %v1142_v20 = vmul.f32 %v1141_v57, %v2299_v28  ;;  %v1143_v59 = vmul.f32 %v1140_v56, %v2302_v29 }
 0x221   : > { %v1317_v60 = vpop.permute.xlu0 %1316  ;;  %2050 = vmatprep.subr.msk.mxu1 %vm254_vm1, %v1143_v59 }
 0x222   : > { %v1318_v61 = vsel %vm415_vm4, %v1315_v19, %v1317_v60  ;;  %v1319_v62 = vsel %vm415_vm4, %v1317_v60, %v1315_v19  ;;  %2051 = vmatpush1.msk.msra.mxu1 %vm254_vm1, %v1142_v20  ;;  %v1323_v63 = vpop.permute.xlu1 %1322 }
 0x223   : > { %v1320_v0 = vmul.f32 %v1319_v62, %v2322_v38  ;;  %v1321_v4 = vmul.f32 %v1318_v61, %v2318_v37 }
 0x224   : > { %2052 = vmatmul.mubr.msk.f32.vlgmr.msra.gmra.mrb[0].mxu1 %vm251_vm3, %v1144_v44 }
 0x225   : > { %v1406_v28 = vpop.permute.xlu0 %1405  ;;  %2053 = vmatprep.subr.msk.mxu1 %vm254_vm1, %v1321_v4  ;;  %1396 = vmatprep.mubr.f32.mxu1 %v2144_v2 }
 0x226   : > { %2054 = vmatpush1.msk.msra.mxu1 %vm254_vm1, %v1320_v0  ;;  %v1408_v29 = vpop.permute.xlu1 %1407 }
 0x227   : > { %v1409_v6 = vsel %vm522_vm5, %v1406_v28, %v1408_v29  ;;  %v1410_v7 = vsel %vm522_vm5, %v1408_v29, %v1406_v28 }
 0x228   : > { %v1412_v38 = vmul.f32 %v1409_v6, %v2336_v45  ;;  %v1411_v9 = vmul.f32 %v1410_v7, %v2348_v50 }
 0x229   : > { %v1414_v8 = vpop.permute.xlu0 %1413 }
 0x22a   : > { %2056 = vmatprep.subr.msk.mxu1 %vm254_vm1, %v1412_v38  ;;  %v1497_v37 = vpop.permute.xlu1 %1496 }
 0x22c   : > { %2055 = vmatmul.mubr.msk.f32.vlgmr.msra.gmra.mrb[0].mxu1 %vm251_vm3, %v1323_v63 }
 0x22d   : > { %2057 = vmatpush1.msk.msra.mxu1 %vm254_vm1, %v1411_v9  ;;  %v1580_v10 = vpop.permute.xlu0 %1579  ;;  %1487 = vmatprep.mubr.f32.mxu1 %v2144_v2 }
 0x22e   : > { %2059 = vmatprep.subr.msk.mxu1 %vm254_vm1, %v2446_v43  ;;  %v1582_v11 = vpop.permute.xlu1 %1581 }
 0x22f   : > { %v1584_v45 = vsel %vm710_vm6, %v1582_v11, %v1580_v10  ;;  %v1583_v22 = vsel %vm710_vm6, %v1580_v10, %v1582_v11 }
 0x230   : > { %v1586_v21 = vmul.f32 %v1584_v45, %v2364_v58  ;;  %v1585_v58 = vmul.f32 %v1583_v22, %v2378_v3 }
 0x231   : > { %v1588_v12 = vpop.permute.xlu0 %1587 }
 0x232   : > { %v1671_v17 = vpop.permute.xlu1 %1670 }
 0x234   : > { %2058 = vmatmul.mubr.msk.f32.vlgmr.msra.gmra.mrb[0].mxu1 %vm251_vm3, %v1414_v8 }
 0x235   : > { %2060 = vmatpush1.msk.msra.mxu1 %vm254_vm1, %v2444_v42  ;;  %v1673_v50 = vpop.permute.xlu0 %1672  ;;  %1570 = vmatprep.mubr.f32.mxu1 %v2144_v2 }
 0x236   : > { %2062 = vmatprep.subr.msk.mxu1 %vm254_vm1, %v1586_v21  ;;  %v1679_v23 = vpop.permute.xlu1 %1678  ;;  %v1675_v24 = vsel %vm817_vm7, %v1673_v50, %v1671_v17  ;;  %v1674_v31 = vsel %vm817_vm7, %v1671_v17, %v1673_v50 }
 0x237   : > { %v1677_v26 = vmul.f32 %v1675_v24, %v2384_v5  ;;  %v1676_v3 = vmul.f32 %v1674_v31, %v2398_v16 }
 0x239   : > { %v1762_v25 = vpop.permute.xlu0 %1761 }
 0x23a   : > { %v1764_v27 = vpop.permute.xlu1 %1763 }
 0x23b   : > { %v1766_v34 = vsel %vm924_vm8, %v1764_v27, %v1762_v25  ;;  %v1765_v15 = vsel %vm924_vm8, %v1762_v25, %v1764_v27 }
 0x23c   : > { %2061 = vmatmul.mubr.msk.f32.vlgmr.msra.gmra.mrb[0].mxu1 %vm251_vm3, %v1497_v37  ;;  %v1768_v5 = vmul.f32 %v1766_v34, %v2404_v18  ;;  %v1767_v16 = vmul.f32 %v1765_v15, %v2418_v30 }
 0x23d   : > { %2063 = vmatpush1.msk.msra.mxu1 %vm254_vm1, %v1585_v58  ;;  %1661 = vmatprep.mubr.f32.mxu1 %v2144_v2  ;;  %v1770_v33 = vpop.permute.xlu0 %1769 }
 0x23e   : > { %2065 = vmatprep.subr.msk.mxu1 %vm254_vm1, %v1677_v26  ;;  %v1853_v39 = vpop.permute.xlu1 %1852 }
 0x241   : > { %v1855_v35 = vpop.permute.xlu0 %1854 }
 0x242   : > { %v1857_v40 = vsel %vm1031_vm9, %v1855_v35, %v1853_v39  ;;  %v1856_v41 = vsel %vm1031_vm9, %v1853_v39, %v1855_v35  ;;  %v1861_v30 = vpop.permute.xlu1 %1860 }
 0x243   : > { %v1859_v18 = vmul.f32 %v1857_v40, %v2424_v32  ;;  %v1858_v42 = vmul.f32 %v1856_v41, %v2434_v36 }
 0x244   : > { %2064 = vmatmul.mubr.msk.f32.vlgmr.msra.gmra.mrb[0].mxu1 %vm251_vm3, %v1588_v12 }
 0x245   : > { %2066 = vmatpush1.msk.msra.mxu1 %vm254_vm1, %v1676_v3  ;;  %1752 = vmatprep.mubr.f32.mxu1 %v2144_v2 }
 0x246   : > { %2068 = vmatprep.subr.msk.mxu1 %vm254_vm1, %v1768_v5 }
 0x24c   : > { %2067 = vmatmul.mubr.msk.f32.vlgmr.msra.gmra.mrb[0].mxu1 %vm251_vm3, %v1679_v23 }
 0x24d   : > { %2069 = vmatpush1.msk.msra.mxu1 %vm254_vm1, %v1767_v16  ;;  %1843 = vmatprep.mubr.f32.mxu1 %v2144_v2 }
 0x24e   : > { %2071 = vmatprep.subr.msk.mxu1 %vm254_vm1, %v1859_v18 }
 0x254   : > { %2070 = vmatmul.mubr.msk.f32.vlgmr.msra.gmra.mrb[0].mxu1 %vm251_vm3, %v1770_v33 }
 0x255   : > { %2072 = vmatpush1.msk.msra.mxu1 %vm254_vm1, %v1858_v42  ;;  %1934 = vmatprep.mubr.f32.mxu1 %v2144_v2 }
 0x25c   : > { %2073 = vmatmul.mubr.msk.f32.vlgmr.msra.gmra.mrb[0].mxu1 %vm251_vm3, %v1861_v30 }
 0x32f   : > { %v1936_v32 = vpop.f32.mrb[0].mxu1 }
 0x330   : > { %v1938_v14 = vpop.f32.mrb[1].mxu1 }
 0x331   : > { %v1945_v43 = vcombine.low %v1936_v32, %v1938_v14 }
 0x333   : > { %v1947_v13 = vadd.f32 %v1945_v43, %v2207_v1 }
 0x335   : > { %1948 = vst [vmem:[%s197_s25] sm:$0xff] %v1947_v13 }
 0x336 PF: > { %s14_s15 = sadd.s32 1, %s2141_s15  }
 0x337   : > { %p11_p4 = scmp.ge.s32.totalorder %s14_s15, 4  }
 0x339   :  { %13 = sbr.rel (!%p11_p4) target bundleno = 1 (0x1), region = 73 }

</bundles_post_ra>
